<compile_context>
chip_gen: v6e
topology: v6e:2x2x1
jax: 0.10.0
libtpu: 0.0.40
codegen_flags: <defaults>
</compile_context>

<pallas_src>
import jax
import jax.numpy as jnp
import numpy as np
from jax.experimental import pallas as pl
from jax.experimental.pallas import tpu as pltpu

LEAKY_SLOPE = 0.2          # nn.LeakyReLU(0.2)
EPS = 1e-5                 # nn.InstanceNorm2d default eps
HIGHEST = jax.lax.Precision.HIGHEST


def resblk_forward(x, style, params, *, matmul_precision=None):
    """x: (B, Cin, H, W) f32 (NCHW, like the PyTorch module); style: (B, S) f32.

    Returns (out, style) with out: (B, Cout, H, W) f32.
    """
    B, Cin, H, W = x.shape
    HW = H * W
    Cout = params['c2w'].shape[-1]
    K1 = 9 * Cin + 1            # conv1 im2col rows + ones row (bias)
    K2 = 10 * Cin + 1           # conv2 im2col rows + shortcut rows + ones row

    # ---- wrapper-side precompute (tiny XLA ops, hoisted out of the kernel) ----
    # AdaIN affine for both norms; pack [gamma1 | beta1 | gamma2 | beta2].
    sv1 = jnp.dot(style, params['a1w'], precision=HIGHEST) + params['a1b']   # (B, 2Cin)
    sv2 = jnp.dot(style, params['a2w'], precision=HIGHEST) + params['a2b']   # (B, 2Cin)
    ada = jnp.concatenate([sv1, sv2], axis=1).reshape(B, 4 * Cin, 1)         # (B, 4Cin, 1)

    # Conv weights HWIO (3,3,Ci,Co) -> (Co, 9*Ci); patch rows are tap-major
    # (tap = ky*3+kx), channel minor.  Biases folded as an extra weight column
    # matched to a ones-row in the patch.  Shortcut 1x1 conv + its bias fused
    # into conv2's matmul.
    c1w_im = params['c1w'].reshape(9 * Cin, Cin).T                            # (Cin, 9Cin)
    w1 = jnp.concatenate([c1w_im, params['c1b'].reshape(Cin, 1)], axis=1)     # (Cin, K1)

    c2w_im = params['c2w'].reshape(9 * Cin, Cout).T                           # (Cout, 9Cin)
    scw = params['scw'].T                                                     # (Cout, Cin)
    b2 = params['c2b'].reshape(Cout, 1) + params['scb'].reshape(Cout, 1)      # (Cout, 1)
    w2 = jnp.concatenate([c2w_im, scw, b2], axis=1)                           # (Cout, K2)

    x_cm = x.reshape(B, Cin, HW)          # channels-first; HW (=256) on lanes

    inv_hw = 1.0 / HW
    PADW = W + 1                          # register-level halo, covers taps |d| <= W+1

    def kernel(x_ref, ada_ref, w1_ref, w2_ref, out_ref):
        xv = x_ref[0]                                      # (Cin, HW)
        ada_v = ada_ref[0]                                 # (4*Cin, 1)
        g1 = ada_v[0 * Cin:1 * Cin]                        # (Cin, 1)
        b1 = ada_v[1 * Cin:2 * Cin]
        g2 = ada_v[2 * Cin:3 * Cin]
        b2_ = ada_v[3 * Cin:4 * Cin]

        # Horizontal wrap masks, built ONCE (pre-broadcast to (Cin, HW)) and
        # reused by both convs.  Vertical out-of-image taps read the zero pad.
        xcol = jax.lax.broadcasted_iota(jnp.int32, (Cin, HW), 1) % W
        m_l = (xcol >= 1).astype(jnp.float32)              # valid for tap ox = -1
        m_r = (xcol <= W - 2).astype(jnp.float32)          # valid for tap ox = +1
        zpad = jnp.zeros((Cin, PADW), jnp.float32)
        ones_row = jnp.ones((1, HW), jnp.float32)

        def adain_leaky(v, g, b):
            # Two independent lane reductions (overlap on the XLU), then one
            # fused per-channel scale/shift; leaky relu as a single max.
            mean = jnp.sum(v, axis=1, keepdims=True) * inv_hw
            msq = jnp.sum(v * v, axis=1, keepdims=True) * inv_hw
            var = msq - mean * mean
            scale = (1.0 + g) * jax.lax.rsqrt(var + EPS)   # rsqrt -> EUP slot
            shift = b - mean * scale
            y = v * scale + shift
            return jnp.maximum(y, LEAKY_SLOPE * y)

        def im2col(v):
            # Zero-padded row in registers; 9 static lane-offset windows.
            vp = jnp.concatenate([zpad, v, zpad], axis=1)  # (Cin, HW + 2W + 2)
            blocks = []
            for oy in (-1, 0, 1):
                for ox in (-1, 0, 1):
                    s = PADW + oy * W + ox
                    win = vp[:, s:s + HW]                  # (Cin, HW)
                    if ox == -1:
                        win = win * m_l
                    elif ox == 1:
                        win = win * m_r
                    blocks.append(win)
            return blocks

        # ---- residual: conv1 (Cin -> Cin), bias folded into the matmul ----
        h = adain_leaky(xv, g1, b1)
        p1 = jnp.concatenate(im2col(h) + [ones_row], axis=0)        # (K1, HW)
        h = jnp.dot(w1_ref[...], p1, precision=matmul_precision,
                    preferred_element_type=jnp.float32)             # (Cin, HW)

        # ---- conv2 (Cin -> Cout) fused with the 1x1 shortcut + both biases ----
        h = adain_leaky(h, g2, b2_)
        p2 = jnp.concatenate(im2col(h) + [xv, ones_row], axis=0)    # (K2, HW)
        out_ref[0] = jnp.dot(w2_ref[...], p2, precision=matmul_precision,
                             preferred_element_type=jnp.float32)    # lane-dense store

    grid_spec = pltpu.PrefetchScalarGridSpec(
        num_scalar_prefetch=0,
        grid=(B,),
        in_specs=[
            pl.BlockSpec((1, Cin, HW), lambda b: (b, 0, 0)),        # x (channels-first)
            pl.BlockSpec((1, 4 * Cin, 1), lambda b: (b, 0, 0)),     # packed gamma/beta
            pl.BlockSpec((Cin, K1), lambda b: (0, 0)),              # conv1 W (+bias col)
            pl.BlockSpec((Cout, K2), lambda b: (0, 0)),             # conv2+shortcut W (+bias col)
        ],
        out_specs=pl.BlockSpec((1, Cout, HW), lambda b: (b, 0, 0)),
    )

    out = pl.pallas_call(
        kernel,
        out_shape=jax.ShapeDtypeStruct((B, Cout, HW), jnp.float32),
        grid_spec=grid_spec,
        compiler_params=pltpu.CompilerParams(
            dimension_semantics=("parallel",)),
    )(x_cm, ada, w1, w2)

    # PyTorch forward returns (output, style) when normalize == 'AdaIN'
    return out.reshape(B, Cout, H, W), style


def resblk_reference(x, style, params):
    """Pure-JAX reference (NCHW), mirrors the PyTorch module semantics."""
    def inorm(v):
        m = jnp.mean(v, axis=(2, 3), keepdims=True)
        var = jnp.mean((v - m) ** 2, axis=(2, 3), keepdims=True)
        return (v - m) * jax.lax.rsqrt(var + EPS)

    def adain(v, w, b):
        C = v.shape[1]
        sv = jnp.dot(style, w, precision=HIGHEST) + b
        gamma = sv[:, :C][:, :, None, None]
        beta = sv[:, C:][:, :, None, None]
        return (1.0 + gamma) * inorm(v) + beta

    def leaky(v):
        return jnp.where(v >= 0, v, LEAKY_SLOPE * v)

    def conv(v, w, b):   # w is HWIO
        y = jax.lax.conv_general_dilated(
            v, w, window_strides=(1, 1), padding='SAME',
            dimension_numbers=('NCHW', 'HWIO', 'NCHW'),
            precision=HIGHEST)
        return y + b.reshape(1, -1, 1, 1)

    h = adain(x, params['a1w'], params['a1b'])
    h = leaky(h)
    h = conv(h, params['c1w'], params['c1b'])
    h = adain(h, params['a2w'], params['a2b'])
    h = leaky(h)
    res = conv(h, params['c2w'], params['c2b'])
    sc = jnp.einsum('bihw,io->bohw', x, params['scw'], precision=HIGHEST)
    sc = sc + params['scb'].reshape(1, -1, 1, 1)
    return sc + res, style


if __name__ == "__main__":
    # small shapes: batch=2, init_channel=4, out_channel=8, spatial=16,
    # style_dim (cfg.latent_shape) = 16
    B, Cin, Cout, H, W, S = 2, 4, 8, 16, 16, 16
    key = jax.random.PRNGKey(0)
    ks = jax.random.split(key, 12)

    x = jax.random.normal(ks[0], (B, Cin, H, W), jnp.float32)
    style = jax.random.normal(ks[1], (B, S), jnp.float32)

    params = dict(
        a1w=0.1 * jax.random.normal(ks[2], (S, 2 * Cin), jnp.float32),       # AdaIN1 Linear W
        a1b=0.1 * jax.random.normal(ks[3], (1, 2 * Cin), jnp.float32),       # AdaIN1 Linear b
        a2w=0.1 * jax.random.normal(ks[4], (S, 2 * Cin), jnp.float32),       # AdaIN2 Linear W
        a2b=0.1 * jax.random.normal(ks[5], (1, 2 * Cin), jnp.float32),       # AdaIN2 Linear b
        c1w=0.1 * jax.random.normal(ks[6], (3, 3, Cin, Cin), jnp.float32),   # conv1 (HWIO)
        c1b=0.1 * jax.random.normal(ks[7], (1, Cin), jnp.float32),
        c2w=0.1 * jax.random.normal(ks[8], (3, 3, Cin, Cout), jnp.float32),  # conv2 (HWIO)
        c2b=0.1 * jax.random.normal(ks[9], (1, Cout), jnp.float32),
        scw=0.1 * jax.random.normal(ks[10], (Cin, Cout), jnp.float32),       # conv1x1
        scb=0.1 * jax.random.normal(ks[11], (1, Cout), jnp.float32),
    )

    out, style_out = jax.block_until_ready(resblk_forward(x, style, params))
    ref, _ = resblk_reference(x, style, params)
    np.testing.assert_allclose(np.asarray(out), np.asarray(ref),
                               rtol=2e-2, atol=2e-2)
    print("KERNEL_OK")
</pallas_src>

<mosaic_0001>
module attributes {stable_mosaic.version = 11 : i64} {
  func.func @kernel(%arg0: i32, %arg1: memref<1x4x256xf32, #tpu.memory_space<vmem>>, %arg2: memref<1x16x1xf32, #tpu.memory_space<vmem>>, %arg3: memref<4x37xf32, #tpu.memory_space<vmem>>, %arg4: memref<8x41xf32, #tpu.memory_space<vmem>>, %arg5: memref<1x8x256xf32, #tpu.memory_space<vmem>>) attributes {dimension_semantics = [#tpu.dimension_semantics<parallel>], iteration_bounds = array<i64: 2>, scalar_prefetch = 0 : i64, scratch_operands = 0 : i64, tpu.core_type = #tpu.core_type<tc>, window_params = [{transform_indices = @transform_0, window_bounds = array<i64: 1, 4, 256>}, {transform_indices = @transform_1, window_bounds = array<i64: 1, 16, 1>}, {pipeline_mode = #tpu.pipeline_mode<synchronous>, transform_indices = @transform_2, window_bounds = array<i64: 4, 37>}, {pipeline_mode = #tpu.pipeline_mode<synchronous>, transform_indices = @transform_3, window_bounds = array<i64: 8, 41>}, {transform_indices = @transform_4, window_bounds = array<i64: 1, 8, 256>}]} {
    %c0 = arith.constant 0 : index
    %c0_0 = arith.constant 0 : index
    %c0_1 = arith.constant 0 : index
    %0 = vector.load %arg1[%c0, %c0_0, %c0_1] : memref<1x4x256xf32, #tpu.memory_space<vmem>>, vector<1x4x256xf32>
    %1 = vector.shape_cast %0 : vector<1x4x256xf32> to vector<4x256xf32>
    %c0_2 = arith.constant 0 : index
    %c0_3 = arith.constant 0 : index
    %c0_4 = arith.constant 0 : index
    %2 = vector.load %arg2[%c0_2, %c0_3, %c0_4] : memref<1x16x1xf32, #tpu.memory_space<vmem>>, vector<1x16x1xf32>
    %3 = vector.shape_cast %2 : vector<1x16x1xf32> to vector<16x1xf32>
    %4 = vector.extract_strided_slice %3 {offsets = [0, 0], sizes = [4, 1], strides = [1, 1]} : vector<16x1xf32> to vector<4x1xf32>
    %5 = vector.extract_strided_slice %3 {offsets = [4, 0], sizes = [4, 1], strides = [1, 1]} : vector<16x1xf32> to vector<4x1xf32>
    %6 = vector.extract_strided_slice %3 {offsets = [8, 0], sizes = [4, 1], strides = [1, 1]} : vector<16x1xf32> to vector<4x1xf32>
    %7 = vector.extract_strided_slice %3 {offsets = [12, 0], sizes = [4, 1], strides = [1, 1]} : vector<16x1xf32> to vector<4x1xf32>
    %8 = tpu.iota {dimensions = array<i32: 1>} : vector<4x256xi32>
    %c16_i32 = arith.constant 16 : i32
    %c0_i32 = arith.constant 0 : i32
    %9 = arith.cmpi eq, %c16_i32, %c0_i32 : i32
    %c1_i32 = arith.constant 1 : i32
    %10 = arith.select %9, %c1_i32, %c16_i32 : i32
    %11 = vector.broadcast %10 : i32 to vector<4x256xi32>
    %12 = arith.remsi %8, %11 : vector<4x256xi32>
    %c0_i32_5 = arith.constant 0 : i32
    %13 = vector.broadcast %c0_i32_5 : i32 to vector<4x256xi32>
    %14 = arith.cmpi ne, %12, %13 : vector<4x256xi32>
    %c0_i32_6 = arith.constant 0 : i32
    %15 = vector.broadcast %c0_i32_6 : i32 to vector<4x256xi32>
    %16 = arith.cmpi slt, %12, %15 : vector<4x256xi32>
    %c0_i32_7 = arith.constant 0 : i32
    %17 = arith.cmpi slt, %10, %c0_i32_7 : i32
    %18 = vector.broadcast %17 : i1 to vector<4x256xi1>
    %19 = vector.broadcast %18 : vector<4x256xi1> to vector<4x256xi1>
    %20 = arith.xori %16, %19 : vector<4x256xi1>
    %21 = arith.andi %20, %14 : vector<4x256xi1>
    %22 = vector.broadcast %10 : i32 to vector<4x256xi32>
    %23 = arith.addi %12, %22 : vector<4x256xi32>
    %24 = arith.select %21, %23, %12 : vector<4x256xi1>, vector<4x256xi32>
    %c1_i32_8 = arith.constant 1 : i32
    %25 = vector.broadcast %c1_i32_8 : i32 to vector<4x256xi32>
    %26 = arith.cmpi sge, %24, %25 : vector<4x256xi32>
    %27 = arith.extui %26 : vector<4x256xi1> to vector<4x256xi32>
    %28 = arith.sitofp %27 : vector<4x256xi32> to vector<4x256xf32>
    %c14_i32 = arith.constant 14 : i32
    %29 = vector.broadcast %c14_i32 : i32 to vector<4x256xi32>
    %30 = arith.cmpi sle, %24, %29 : vector<4x256xi32>
    %31 = arith.extui %30 : vector<4x256xi1> to vector<4x256xi32>
    %32 = arith.sitofp %31 : vector<4x256xi32> to vector<4x256xf32>
    %cst = arith.constant 0.000000e+00 : f32
    %33 = vector.broadcast %cst : f32 to vector<4x17xf32>
    %cst_9 = arith.constant 1.000000e+00 : f32
    %34 = vector.broadcast %cst_9 : f32 to vector<1x256xf32>
    %cst_10 = arith.constant dense<0.000000e+00> : vector<4xf32>
    %35 = vector.multi_reduction <add>, %1, %cst_10 [1] : vector<4x256xf32> to vector<4xf32>
    %36 = vector.shape_cast %35 : vector<4xf32> to vector<4x1xf32>
    %cst_11 = arith.constant 3.906250e-03 : f32
    %37 = vector.broadcast %cst_11 : f32 to vector<4x1xf32>
    %38 = arith.mulf %36, %37 : vector<4x1xf32>
    %39 = arith.mulf %1, %1 : vector<4x256xf32>
    %cst_12 = arith.constant dense<0.000000e+00> : vector<4xf32>
    %40 = vector.multi_reduction <add>, %39, %cst_12 [1] : vector<4x256xf32> to vector<4xf32>
    %41 = vector.shape_cast %40 : vector<4xf32> to vector<4x1xf32>
    %cst_13 = arith.constant 3.906250e-03 : f32
    %42 = vector.broadcast %cst_13 : f32 to vector<4x1xf32>
    %43 = arith.mulf %41, %42 : vector<4x1xf32>
    %44 = arith.mulf %38, %38 : vector<4x1xf32>
    %45 = arith.subf %43, %44 : vector<4x1xf32>
    %cst_14 = arith.constant 1.000000e+00 : f32
    %46 = vector.broadcast %cst_14 : f32 to vector<4x1xf32>
    %47 = arith.addf %46, %4 : vector<4x1xf32>
    %cst_15 = arith.constant 9.99999974E-6 : f32
    %48 = vector.broadcast %cst_15 : f32 to vector<4x1xf32>
    %49 = arith.addf %45, %48 : vector<4x1xf32>
    %50 = math.rsqrt %49 : vector<4x1xf32>
    %51 = arith.mulf %47, %50 : vector<4x1xf32>
    %52 = arith.mulf %38, %51 : vector<4x1xf32>
    %53 = arith.subf %5, %52 : vector<4x1xf32>
    %54 = vector.broadcast %51 : vector<4x1xf32> to vector<4x256xf32>
    %55 = arith.mulf %1, %54 : vector<4x256xf32>
    %56 = vector.broadcast %53 : vector<4x1xf32> to vector<4x256xf32>
    %57 = arith.addf %55, %56 : vector<4x256xf32>
    %cst_16 = arith.constant 2.000000e-01 : f32
    %58 = vector.broadcast %cst_16 : f32 to vector<4x256xf32>
    %59 = arith.mulf %58, %57 : vector<4x256xf32>
    %60 = arith.maximumf %57, %59 : vector<4x256xf32>
    %61 = tpu.concatenate %33, %60, %33 in 1 : vector<4x17xf32>, vector<4x256xf32>, vector<4x17xf32> -> vector<4x290xf32>
    %62 = vector.extract_strided_slice %61 {offsets = [0, 0], sizes = [4, 256], strides = [1, 1]} : vector<4x290xf32> to vector<4x256xf32>
    %63 = arith.mulf %62, %28 : vector<4x256xf32>
    %64 = vector.extract_strided_slice %61 {offsets = [0, 1], sizes = [4, 256], strides = [1, 1]} : vector<4x290xf32> to vector<4x256xf32>
    %65 = vector.extract_strided_slice %61 {offsets = [0, 2], sizes = [4, 256], strides = [1, 1]} : vector<4x290xf32> to vector<4x256xf32>
    %66 = arith.mulf %65, %32 : vector<4x256xf32>
    %67 = vector.extract_strided_slice %61 {offsets = [0, 16], sizes = [4, 256], strides = [1, 1]} : vector<4x290xf32> to vector<4x256xf32>
    %68 = arith.mulf %67, %28 : vector<4x256xf32>
    %69 = vector.extract_strided_slice %61 {offsets = [0, 17], sizes = [4, 256], strides = [1, 1]} : vector<4x290xf32> to vector<4x256xf32>
    %70 = vector.extract_strided_slice %61 {offsets = [0, 18], sizes = [4, 256], strides = [1, 1]} : vector<4x290xf32> to vector<4x256xf32>
    %71 = arith.mulf %70, %32 : vector<4x256xf32>
    %72 = vector.extract_strided_slice %61 {offsets = [0, 32], sizes = [4, 256], strides = [1, 1]} : vector<4x290xf32> to vector<4x256xf32>
    %73 = arith.mulf %72, %28 : vector<4x256xf32>
    %74 = vector.extract_strided_slice %61 {offsets = [0, 33], sizes = [4, 256], strides = [1, 1]} : vector<4x290xf32> to vector<4x256xf32>
    %75 = vector.extract_strided_slice %61 {offsets = [0, 34], sizes = [4, 256], strides = [1, 1]} : vector<4x290xf32> to vector<4x256xf32>
    %76 = arith.mulf %75, %32 : vector<4x256xf32>
    %77 = tpu.concatenate %63, %64, %66, %68, %69, %71, %73, %74, %76, %34 in 0 : vector<4x256xf32>, vector<4x256xf32>, vector<4x256xf32>, vector<4x256xf32>, vector<4x256xf32>, vector<4x256xf32>, vector<4x256xf32>, vector<4x256xf32>, vector<4x256xf32>, vector<1x256xf32> -> vector<37x256xf32>
    %c0_17 = arith.constant 0 : index
    %c0_18 = arith.constant 0 : index
    %78 = vector.load %arg3[%c0_17, %c0_18] : memref<4x37xf32, #tpu.memory_space<vmem>>, vector<4x37xf32>
    %cst_19 = arith.constant dense<0.000000e+00> : vector<4x256xf32>
    %79 = tpu.matmul %78, %77, %cst_19 {dimension_numbers = #tpu.dot_dimension_numbers<[1], [0], [0], [1], [0, 0, 1, 1], [], []>} : vector<4x37xf32>, vector<37x256xf32>, vector<4x256xf32> -> vector<4x256xf32>
    %cst_20 = arith.constant dense<0.000000e+00> : vector<4xf32>
    %80 = vector.multi_reduction <add>, %79, %cst_20 [1] : vector<4x256xf32> to vector<4xf32>
    %81 = vector.shape_cast %80 : vector<4xf32> to vector<4x1xf32>
    %cst_21 = arith.constant 3.906250e-03 : f32
    %82 = vector.broadcast %cst_21 : f32 to vector<4x1xf32>
    %83 = arith.mulf %81, %82 : vector<4x1xf32>
    %84 = arith.mulf %79, %79 : vector<4x256xf32>
    %cst_22 = arith.constant dense<0.000000e+00> : vector<4xf32>
    %85 = vector.multi_reduction <add>, %84, %cst_22 [1] : vector<4x256xf32> to vector<4xf32>
    %86 = vector.shape_cast %85 : vector<4xf32> to vector<4x1xf32>
    %cst_23 = arith.constant 3.906250e-03 : f32
    %87 = vector.broadcast %cst_23 : f32 to vector<4x1xf32>
    %88 = arith.mulf %86, %87 : vector<4x1xf32>
    %89 = arith.mulf %83, %83 : vector<4x1xf32>
    %90 = arith.subf %88, %89 : vector<4x1xf32>
    %cst_24 = arith.constant 1.000000e+00 : f32
    %91 = vector.broadcast %cst_24 : f32 to vector<4x1xf32>
    %92 = arith.addf %91, %6 : vector<4x1xf32>
    %cst_25 = arith.constant 9.99999974E-6 : f32
    %93 = vector.broadcast %cst_25 : f32 to vector<4x1xf32>
    %94 = arith.addf %90, %93 : vector<4x1xf32>
    %95 = math.rsqrt %94 : vector<4x1xf32>
    %96 = arith.mulf %92, %95 : vector<4x1xf32>
    %97 = arith.mulf %83, %96 : vector<4x1xf32>
    %98 = arith.subf %7, %97 : vector<4x1xf32>
    %99 = vector.broadcast %96 : vector<4x1xf32> to vector<4x256xf32>
    %100 = arith.mulf %79, %99 : vector<4x256xf32>
    %101 = vector.broadcast %98 : vector<4x1xf32> to vector<4x256xf32>
    %102 = arith.addf %100, %101 : vector<4x256xf32>
    %cst_26 = arith.constant 2.000000e-01 : f32
    %103 = vector.broadcast %cst_26 : f32 to vector<4x256xf32>
    %104 = arith.mulf %103, %102 : vector<4x256xf32>
    %105 = arith.maximumf %102, %104 : vector<4x256xf32>
    %106 = tpu.concatenate %33, %105, %33 in 1 : vector<4x17xf32>, vector<4x256xf32>, vector<4x17xf32> -> vector<4x290xf32>
    %107 = vector.extract_strided_slice %106 {offsets = [0, 0], sizes = [4, 256], strides = [1, 1]} : vector<4x290xf32> to vector<4x256xf32>
    %108 = arith.mulf %107, %28 : vector<4x256xf32>
    %109 = vector.extract_strided_slice %106 {offsets = [0, 1], sizes = [4, 256], strides = [1, 1]} : vector<4x290xf32> to vector<4x256xf32>
    %110 = vector.extract_strided_slice %106 {offsets = [0, 2], sizes = [4, 256], strides = [1, 1]} : vector<4x290xf32> to vector<4x256xf32>
    %111 = arith.mulf %110, %32 : vector<4x256xf32>
    %112 = vector.extract_strided_slice %106 {offsets = [0, 16], sizes = [4, 256], strides = [1, 1]} : vector<4x290xf32> to vector<4x256xf32>
    %113 = arith.mulf %112, %28 : vector<4x256xf32>
    %114 = vector.extract_strided_slice %106 {offsets = [0, 17], sizes = [4, 256], strides = [1, 1]} : vector<4x290xf32> to vector<4x256xf32>
    %115 = vector.extract_strided_slice %106 {offsets = [0, 18], sizes = [4, 256], strides = [1, 1]} : vector<4x290xf32> to vector<4x256xf32>
    %116 = arith.mulf %115, %32 : vector<4x256xf32>
    %117 = vector.extract_strided_slice %106 {offsets = [0, 32], sizes = [4, 256], strides = [1, 1]} : vector<4x290xf32> to vector<4x256xf32>
    %118 = arith.mulf %117, %28 : vector<4x256xf32>
    %119 = vector.extract_strided_slice %106 {offsets = [0, 33], sizes = [4, 256], strides = [1, 1]} : vector<4x290xf32> to vector<4x256xf32>
    %120 = vector.extract_strided_slice %106 {offsets = [0, 34], sizes = [4, 256], strides = [1, 1]} : vector<4x290xf32> to vector<4x256xf32>
    %121 = arith.mulf %120, %32 : vector<4x256xf32>
    %122 = tpu.concatenate %108, %109, %111, %113, %114, %116, %118, %119, %121, %1, %34 in 0 : vector<4x256xf32>, vector<4x256xf32>, vector<4x256xf32>, vector<4x256xf32>, vector<4x256xf32>, vector<4x256xf32>, vector<4x256xf32>, vector<4x256xf32>, vector<4x256xf32>, vector<4x256xf32>, vector<1x256xf32> -> vector<41x256xf32>
    %c0_27 = arith.constant 0 : index
    %c0_28 = arith.constant 0 : index
    %123 = vector.load %arg4[%c0_27, %c0_28] : memref<8x41xf32, #tpu.memory_space<vmem>>, vector<8x41xf32>
    %cst_29 = arith.constant dense<0.000000e+00> : vector<8x256xf32>
    %124 = tpu.matmul %123, %122, %cst_29 {dimension_numbers = #tpu.dot_dimension_numbers<[1], [0], [0], [1], [0, 0, 1, 1], [], []>} : vector<8x41xf32>, vector<41x256xf32>, vector<8x256xf32> -> vector<8x256xf32>
    %c0_30 = arith.constant 0 : index
    %c0_31 = arith.constant 0 : index
    %c0_32 = arith.constant 0 : index
    %125 = vector.load %arg5[%c0_30, %c0_31, %c0_32] : memref<1x8x256xf32, #tpu.memory_space<vmem>>, vector<1x8x256xf32>
    %126 = vector.shape_cast %125 : vector<1x8x256xf32> to vector<8x256xf32>
    %127 = vector.shape_cast %124 : vector<8x256xf32> to vector<1x8x256xf32>
    tpu.vector_store %arg5[%c0_30, %c0_31, %c0_32], %127 {strides = array<i32>} : memref<1x8x256xf32, #tpu.memory_space<vmem>>, vector<1x8x256xf32>,
    return
  }
  func.func @transform_0(%arg0: i32) -> (i32, i32, i32) {
    %c0_i32 = arith.constant 0 : i32
    %c0_i32_0 = arith.constant 0 : i32
    %c0_i32_1 = arith.constant 0 : i32
    return %arg0, %c0_i32, %c0_i32_0 : i32, i32, i32
  }
  func.func @transform_1(%arg0: i32) -> (i32, i32, i32) {
    %c0_i32 = arith.constant 0 : i32
    %c0_i32_0 = arith.constant 0 : i32
    %c0_i32_1 = arith.constant 0 : i32
    return %arg0, %c0_i32, %c0_i32_0 : i32, i32, i32
  }
  func.func @transform_2(%arg0: i32) -> (i32, i32) {
    %c0_i32 = arith.constant 0 : i32
    %c0_i32_0 = arith.constant 0 : i32
    %c0_i32_1 = arith.constant 0 : i32
    return %c0_i32, %c0_i32_0 : i32, i32
  }
  func.func @transform_3(%arg0: i32) -> (i32, i32) {
    %c0_i32 = arith.constant 0 : i32
    %c0_i32_0 = arith.constant 0 : i32
    %c0_i32_1 = arith.constant 0 : i32
    return %c0_i32, %c0_i32_0 : i32, i32
  }
  func.func @transform_4(%arg0: i32) -> (i32, i32, i32) {
    %c0_i32 = arith.constant 0 : i32
    %c0_i32_0 = arith.constant 0 : i32
    %c0_i32_1 = arith.constant 0 : i32
    return %arg0, %c0_i32, %c0_i32_0 : i32, i32, i32
  }
}

</mosaic_0001>

<bundles_post_ra>
// kernel: tpu_custom_call.1
= control target key start
LH: loop header
LB: loop body
LE: loop exit
PB: predicated region body
PF: predicated region fallthrough
CT: control target
= control target key end

     0   :  { %9 = vsyncpa [#allocation3], 0  ;;  %s1550_s0 = inlined_call_operand.vmem [shape: f32[2,4,256], index: 0, kind: input, shape index: {}]   ;;  %s1551_s1 = inlined_call_operand.vmem [shape: f32[2,16,1], index: 1, kind: input, shape index: {}]   ;;  %s1552_s2 = inlined_call_operand.vmem [shape: f32[4,37], index: 2, kind: input, shape index: {}]   ;;  %s1553_s3 = inlined_call_operand.vmem [shape: f32[8,41], index: 3, kind: input, shape index: {}]   ;;  %s1554_s4 = inlined_call_operand.hbm [shape: f32[2,8,256], index: 4, kind: output, shape index: {}]  }
   0x1   :  { %11 = vsyncpa [#allocation3 + $0x1], 0  ;;  %s1187_s15 = smov 0   ;;  %s1189_s16 = smov 0  }
   0x2   :  { %s1191_s17 = smov 0   ;;  %s1193_s18 = smov 0  }
   0x3 LB: > { %s1208_s19 = sadd.s32 4294967295, %s1140_s18   ;;  %s962_s20 = sadd.s32 4294967294, %s1140_s18   ;;  %s1140_s18 = sphi %s1193_s18, %s1560_s18   ;;  %s1136_s17 = sphi %s1191_s17, %s1559_s17   ;;  %s1132_s16 = sphi %s1189_s16, %s1558_s16   ;;  %s1128_s15 = sphi %s1187_s15, %s1557_s15  }
   0x4   : > { %s1212_s21 = sadd.s32 1, %s1140_s18   ;;  %s118_s22 = sadd.s32 1, %s1136_s17 }
   0x5   : > { %s115_s23 = ssub.s32 %s1140_s18, %s1212_s21  ;;  %p128_p0 = scmp.ne.s32.totalorder %s1136_s17, %s1132_s16 }
   0x6   : > { %p116_p1 = scmp.eq.s32.totalorder %s115_s23, 0  ;;  %p129_p2 = scmp.eq.s32.totalorder %s1208_s19, 1 }
   0x7   : > { %p134_p3 = scmp.ne.s32.totalorder %s1132_s16, %s1128_s15  ;;  %p135_p4 = scmp.eq.s32.totalorder %s962_s20, 1 }
   0x8   : > { %s1223_s24 = scalar_select %p116_p1, %s1136_s17, %s118_s22  }
   0x9   : > { %p1225_p5 = por %p129_p2, %p128_p0  ;;  %p1229_p6 = por %p135_p4, %p134_p3 }
   0xa   : > { %p965_p7 = scmp.ge.s32.totalorder %s1140_s18, 1  ;;  %p175_p8 = scmp.lt.s32.totalorder %s1140_s18, 3 }
   0xc   : > { %p176_p9 = pnand %p965_p7, %p175_p8 }
   0xd   : > { %p206_p10 = scmp.lt.s32.totalorder (!%p176_p9), %s1208_s19, 1  ;;  %s1144_s10 = smov (!%p176_p9), 34  }
   0xe   : > { %179 = sbr.rel (%p176_p9) target bundleno = 1605 (0x645), region = 36  ;;  %s1145_s11 = smov (!%p176_p9), 18  }
   0xf   : > { %s1146_s12 = smov (!%p176_p9), 32   ;;  %s1149_s13 = smov (!%p176_p9), 17  }
  0x10   : > { %s1150_s14 = smov (!%p176_p9), 16   ;;  %s1151_s20 = smov (!%p176_p9), 2  }
  0x11   : > { %s1152_s22 = smov (!%p176_p9), 111   ;;  %s1153_s23 = smov (!%p176_p9), 94  }
  0x12   : > { %s1156_s29 = smov (!%p176_p9), 126   ;;  %s1157_s30 = smov (!%p176_p9), 110  }
  0x13   : > { %s1237_s27 = scalar_select %p206_p10, %s1208_s19, 1  ;;  %vm261_vm0 = vcmask 1043456   ;;  %v1142_v10 = vmov 0   ;;  %v219_v18 = vlaneseq  ;;  %v1143_v26 = vmov 0.0  }
  0x14   : > { %1047 = vset.pattern.permute.xlu1 %v1142_v10  ;;  %1073 = vset.pattern.permute.xlu0 %v1142_v10  ;;  %v1147_v37 = vmov 839922192   ;;  %v1148_v41 = vmov 1985246804   ;;  %vm323_vm5 = vcmask 138240   ;;  %vm388_vm6 = vcmask 277504  }
  0x15   : > { %s986_s28 = sshll.u32 %s1237_s27, 3  ;;  %s987_s6 = sshll.u32 %s1237_s27, 4  ;;  %v220_v19 = vand.u32 127, %v219_v18  ;;  %596 = vmatprep.mubr.f32.mxu0 %v1143_v26  ;;  %867 = vmatprep.mubr.f32.mxu1 %v1143_v26  ;;  %v294_v38 = vunpack.c.l.s4 %v1147_v37  ;;  %v297_v40 = vshrl.u32 %v219_v18, 7  ;;  %v307_v42 = vunpack.c.l.s4 %v1148_v41 }
  0x16   : > { %s210_s5 = scalar_lea.vmem %s1550_s0, %s986_s28  ;;  %s1258_s9 = scalar_lea.vmem %s1551_s1, %s987_s6  ;;  %vm376_vm7 = vcmask 261120   ;;  %vm338_vm8 = vcmask 15360   ;;  %vm364_vm9 = vcmask 146432   ;;  %vm352_vm10 = vcmask 130048  }
  0x17   : > { %v1243_v0 = vld [vmem:[%s210_s5] sm:$0xff]  ;;  %v221_v21 = vadd.s32 128, %v220_v19  ;;  %v226_v23 = vand.u32 15, %v220_v19  ;;  %v295_v39 = vunpack.c.0.s8 %v294_v38  ;;  %v308_v44 = vunpack.c.0.s8 %v307_v42  ;;  %s1154_s27 = smov 96   ;;  %s1155_s28 = smov 95  }
  0x18   : > { %v259_v1 = vcombine.high %v1243_v0, %v1243_v0  ;;  %v262_v2 = vsel %vm261_vm0, %v1243_v0, 0.0  ;;  %v268_v3 = vmul.f32 %v1243_v0, %v1243_v0  ;;  %v217_v20 = vld [vmem:[%s1258_s9] sm:$0xff]  ;;  %s1158_s5 = smov 127   ;;  %s1159_s6 = smov 112   ;;  %vm505_vm11 = vcmask 769024  }
  0x19   : > { %v280_v22 = vadd.f32 1.0, %v217_v20  ;;  %v233_v24 = vand.u32 15, %v221_v21  ;;  %vm252_vm1 = vcmp.le.s32.totalorder %v226_v23, 14  ;;  %vm246_vm3 = vcmp.ge.s32.totalorder %v226_v23, 1 }
  0x1a   : > { %v263_v4 = vsel %vm261_vm0, %v259_v1, 0.0  ;;  %v270_v5 = vcombine.high %v268_v3, %v268_v3  ;;  %v272_v6 = vsel %vm261_vm0, %v268_v3, 0.0  ;;  %v973_v30 = vsel %vm252_vm1, 1.0, %v1143_v26 }
  0x1b   : > { %v264_v7 = vadd.f32 %v263_v4, %v262_v2  ;;  %vm253_vm2 = vcmp.le.s32.totalorder %v233_v24, 14  ;;  %vm247_vm4 = vcmp.ge.s32.totalorder %v233_v24, 1  ;;  %v1261_v34 = vsel %vm246_vm3, 1.0, %v1143_v26 }
  0x1c   : > { %v273_v8 = vsel %vm261_vm0, %v270_v5, 0.0  ;;  %v974_v31 = vsel %vm253_vm2, 1.0, %v1143_v26  ;;  %v1263_v35 = vsel %vm247_vm4, 1.0, %v1143_v26  ;;  %v298_v43 = vsub.s32 %v295_v39, %v297_v40 }
  0x1d   : > { %265 = vadd.xlane.f32.xlu0 %v264_v7  ;;  %v274_v9 = vadd.f32 %v273_v8, %v272_v6  ;;  %v1048_v33 = vpack.i.bf16 %v974_v31, %v973_v30  ;;  %v1058_v36 = vpack.i.bf16 %v1263_v35, %v1261_v34  ;;  %v311_v47 = vsub.s32 %v308_v44, %v297_v40 }
  0x1e   : > { %vm525_vm12 = vcmask 1044480   ;;  %vm480_vm13 = vcmask 785408   ;;  %vm491_vm14 = vcmask 777216   ;;  %vm466_vm15 = vcmask 900096  }
  0x1f   : > { %vm449_vm1 = vcmask 908288   ;;  %vm438_vm2 = vcmask 916480   ;;  %vm421_vm3 = vcmask 1031168   ;;  %vm407_vm4 = vcmask 1039360  }
  0x21   : > { %275 = vadd.xlane.f32.xlu0 %v274_v9 }
  0xa6   : > { %v266_v11 = vpop.xlane.xlu0 %265 }
  0xa7   : > { %v267_v12 = vmul.f32 0.00390625, %v266_v11 }
  0xa9   : > { %v278_v14 = vmul.f32 %v267_v12, %v267_v12 }
  0xaa   : > { %v276_v13 = vpop.xlane.xlu0 %275 }
  0xab   : > { %v277_v15 = vmul.f32 0.00390625, %v276_v13 }
  0xad   : > { %v279_v16 = vsub.f32 %v277_v15, %v278_v14 }
  0xaf   : > { %v281_v17 = vadd.f32 1e-05, %v279_v16 }
  0xb1   : > { %1076 = vrsqrt.f32 %v281_v17 }
  0xbe   : > { %v1077_v25 = vpop.eup %1076 }
  0xbf   : > { %v283_v27 = vmul.f32 %v1077_v25, %v280_v22 }
  0xc1   : > { %291 = vperm.xlu1 %1047, %v283_v27   ;;  %v284_v28 = vmul.f32 %v283_v27, %v267_v12 }
  0xc3   : > { %v286_v29 = vrot.slane %v284_v28, 4 }
  0xc5   : > { %v288_v32 = vsub.f32 %v217_v20, %v286_v29 }
  0xc7   : > { %304 = vperm.xlu1 %1047, %v288_v32  }
  0xcb   : > { %1049 = vrot.lane.b32.xlu1 %v1048_v33, %s1144_s10 }
  0xcf   : > { %1054 = vrot.lane.b32.xlu1 %v1048_v33, %s1145_s11  ;;  %s203_s11 = sand.u32 1, %s1132_s16  }
  0xd3   : > { %1059 = vrot.lane.b32.xlu1 %v1058_v36, %s1146_s12  ;;  %s966_s12 = sshll.u32 %s203_s11, 4 }
 0x13c   : > { %v292_v45 = vpop.permute.xlu1 %291 }
 0x13d   : > { %v299_v46 = vrot.slane %v292_v45, %v298_v43 }
 0x13f   : > { %v301_v49 = vmul.f32 %v299_v46, %v1243_v0 }
 0x142   : > { %v305_v48 = vpop.permute.xlu1 %304 }
 0x143   : > { %v312_v50 = vrot.slane %v305_v48, %v311_v47 }
 0x145   : > { %v314_v51 = vadd.f32 %v312_v50, %v301_v49 }
 0x146   : > { %v1050_v55 = vpop.permute.xlu1 %1049 }
 0x147   : > { %v315_v52 = vmul.f32 0.2, %v314_v51  ;;  %v1270_v58 = vunpack.i.l.bf16 %v1050_v55  ;;  %v1289_v4 = vunpack.i.h.bf16 %v1050_v55 }
 0x149   : > { %v316_v53 = vmax.f32 %v314_v51, %v315_v52  ;;  %v1304_v10 = vsel %vm388_vm6, %v1270_v58, %v1289_v4  ;;  %vm521_vm6 = vcmask 302080  }
 0x14a   : > { %v1055_v56 = vpop.permute.xlu1 %1054 }
 0x14b   : > { %319 = vrot.lane.b32.xlu0 %v316_v53, %s1149_s13  ;;  %v318_v54 = vcombine.high %v316_v53, %v316_v53  ;;  %v1319_v16 = vunpack.i.l.bf16 %v1055_v56  ;;  %v1338_v25 = vunpack.i.h.bf16 %v1055_v56 }
 0x14d   : > { %321 = vrot.lane.b32.xlu1 %v318_v54, %s1149_s13  ;;  %v1352_v30 = vsel %vm364_vm9, %v1319_v16, %v1338_v25 }
 0x14e   : > { %v1060_v57 = vpop.permute.xlu1 %1059 }
 0x14f   : > { %v1272_v59 = vunpack.i.l.bf16 %v1060_v57  ;;  %v1306_v11 = vunpack.i.h.bf16 %v1060_v57 }
 0x151   : > { %1064 = vrot.lane.b32.xlu1 %v1058_v36, %s1150_s14  ;;  %v1316_v15 = vsel %vm376_vm7, %v1272_v59, %v1306_v11  ;;  %vm799_vm7 = vcmask 1040384  }
 0x155   : > { %1069 = vrot.lane.b32.xlu1 %v1048_v33, %s1151_s20  ;;  %s988_s20 = sshll.u32 %s1208_s19, 8  ;;  %s1161_s19 = smov [#allocation2]  }
 0x1bd   : > { %v320_v60 = vpop.permute.xlu0 %319 }
 0x1be   : > { %v1275_v61 = vsel %vm323_vm5, 0.0, %v320_v60 }
 0x1bf   : > { %443 = vrot.lane.b32.xlu1 %v1275_v61, %s1152_s22  ;;  %v322_v62 = vpop.permute.xlu1 %321  ;;  %v393_v63 = vmul.f32 %v1270_v58, %v1275_v61  ;;  %v381_v1 = vmul.f32 %v1272_v59, %v1275_v61  ;;  %v398_v3 = vrot.slane %v1275_v61, 4  ;;  %v369_v20 = vmul.f32 %v1319_v16, %v1275_v61 }
 0x1c0   : > { %v1292_v5 = vsel %vm323_vm5, %v320_v60, %v322_v62  ;;  %v329_v7 = vsel %vm323_vm5, %v322_v62, 0.0 }
 0x1c1   : > { %499 = vrot.lane.b32.xlu0 %v393_v63, %s1153_s23  ;;  %v394_v12 = vmul.f32 %v1304_v10, %v1292_v5  ;;  %v395_v13 = vmul.f32 %v1289_v4, %v329_v7  ;;  %v383_v14 = vmul.f32 %v1306_v11, %v329_v7  ;;  %v382_v17 = vmul.f32 %v1316_v15, %v1292_v5 }
 0x1c2   : > { %v400_v19 = vrot.slane %v329_v7, 4  ;;  %v399_v21 = vrot.slane %v1292_v5, 4  ;;  %v457_v23 = vrot.slane %v369_v20, 4  ;;  %v370_v31 = vmul.f32 %v1352_v30, %v1292_v5 }
 0x1c3   : > { %v1065_v2 = vpop.permute.xlu1 %1064  ;;  %474 = vrot.lane.b32.xlu1 %v381_v1, %s1154_s27  ;;  %v371_v33 = vmul.f32 %v1338_v25, %v329_v7 }
 0x1c4   : > { %v1331_v22 = vunpack.i.l.bf16 %v1065_v2  ;;  %v1343_v27 = vunpack.i.h.bf16 %v1065_v2  ;;  %v458_v37 = vrot.slane %v370_v31, 4 }
 0x1c5   : > { %485 = vrot.lane.b32.xlu0 %v398_v3, %s1155_s28  ;;  %v459_v39 = vrot.slane %v371_v33, 4 }
 0x1c6   : > { %v357_v29 = vmul.f32 %v1331_v22, %v1275_v61  ;;  %v1359_v36 = vsel %vm352_vm10, %v1331_v22, %v1343_v27  ;;  %v359_v40 = vmul.f32 %v1343_v27, %v329_v7 }
 0x1c7   : > { %v1070_v6 = vpop.permute.xlu1 %1069  ;;  %445 = vrot.lane.b32.xlu1 %v1292_v5, %s1152_s22  ;;  %v358_v38 = vmul.f32 %v1359_v36, %v1292_v5 }
 0x1c8   : > { %v1297_v8 = vunpack.i.l.bf16 %v1070_v6  ;;  %v1324_v18 = vunpack.i.h.bf16 %v1070_v6  ;;  %v429_v32 = vrot.slane %v357_v29, 4  ;;  %v431_v42 = vrot.slane %v359_v40, 4 }
 0x1c9   : > { %447 = vrot.lane.b32.xlu0 %v329_v7, %s1152_s22  ;;  %v430_v41 = vrot.slane %v358_v38, 4 }
 0x1ca   : > { %v343_v9 = vmul.f32 %v1297_v8, %v1275_v61  ;;  %v1335_v24 = vsel %vm338_vm8, %v1297_v8, %v1324_v18  ;;  %v345_v28 = vmul.f32 %v1324_v18, %v329_v7 }
 0x1cb   : > { %v344_v26 = vmul.f32 %v1335_v24, %v1292_v5 }
 0x1cc   : > { %415 = vrot.lane.b32.xlu1 %v343_v9, %s1156_s29 }
 0x1cd   : > { %501 = vrot.lane.b32.xlu0 %v394_v12, %s1153_s23 }
 0x1d0   : > { %503 = vrot.lane.b32.xlu1 %v395_v13, %s1153_s23 }
 0x1d1   : > { %478 = vrot.lane.b32.xlu0 %v383_v14, %s1154_s27 }
 0x1d4   : > { %476 = vrot.lane.b32.xlu1 %v382_v17, %s1154_s27 }
 0x1d5   : > { %489 = vrot.lane.b32.xlu0 %v400_v19, %s1155_s28 }
 0x1d8   : > { %487 = vrot.lane.b32.xlu1 %v399_v21, %s1155_s28 }
 0x1d9   : > { %460 = vrot.lane.b32.xlu0 %v457_v23, %s1157_s30 }
 0x1dc   : > { %417 = vrot.lane.b32.xlu1 %v344_v26, %s1156_s29 }
 0x1dd   : > { %419 = vrot.lane.b32.xlu0 %v345_v28, %s1156_s29 }
 0x1e0   : > { %403 = vrot.lane.b32.xlu1 %v399_v21, %s1158_s5 }
 0x1e1   : > { %432 = vrot.lane.b32.xlu0 %v429_v32, %s1159_s6 }
 0x1e4   : > { %462 = vrot.lane.b32.xlu1 %v458_v37, %s1157_s30 }
 0x1e5   : > { %464 = vrot.lane.b32.xlu0 %v459_v39, %s1157_s30 }
 0x1e8   : > { %434 = vrot.lane.b32.xlu1 %v430_v41, %s1159_s6 }
 0x1e9   : > { %436 = vrot.lane.b32.xlu0 %v431_v42, %s1159_s6 }
 0x1ec   : > { %401 = vrot.lane.b32.xlu1 %v398_v3, %s1158_s5 }
 0x1ed   : > { %405 = vrot.lane.b32.xlu0 %v400_v19, %s1158_s5 }
 0x231   : > { %v444_v43 = vpop.permute.xlu1 %443 }
 0x233   : > { %v500_v44 = vpop.permute.xlu0 %499 }
 0x235   : > { %v475_v45 = vpop.permute.xlu1 %474 }
 0x237   : > { %v486_v46 = vpop.permute.xlu0 %485 }
 0x239   : > { %v446_v47 = vpop.permute.xlu1 %445 }
 0x23a   : > { %v450_v28 = vsel %vm449_vm1, %v444_v43, %v446_v47 }
 0x23b   : > { %v448_v48 = vpop.permute.xlu0 %447 }
 0x23c   : > { %v451_v23 = vsel %vm449_vm1, %v446_v47, %v448_v48  ;;  %v330_v48 = vmul.f32 %v1261_v34, %v1275_v61 }
 0x23e   : > { %v416_v49 = vpop.permute.xlu1 %415 }
 0x23f   : > { %v502_v50 = vpop.permute.xlu0 %501 }
 0x240   : > { %v506_v51 = vsel %vm505_vm11, %v500_v44, %v502_v50 }
 0x241   : > { %v518_v56 = vsel %vm261_vm0, %v506_v51, 1.0 }
 0x242   : > { %v504_v52 = vpop.permute.xlu1 %503 }
 0x243   : > { %v479_v53 = vpop.permute.xlu0 %478  ;;  %v507_v54 = vsel %vm505_vm11, %v502_v50, %v504_v52  ;;  %v520_v50 = vld [vmem:[%s1552_s2] sm:$0xf] }
 0x244   : > { %v519_v55 = vsel %vm261_vm0, %v507_v54, 1.0 }
 0x245   : > { %975 = vmatprep.subr.msk.mxu0 %vm525_vm12, %v519_v55 }
 0x246   : > { %v477_v57 = vpop.permute.xlu1 %476  ;;  %976 = vmatpush1.msk.msra.mxu0 %vm525_vm12, %v518_v56 }
 0x247   : > { %v490_v60 = vpop.permute.xlu0 %489  ;;  %v481_v63 = vsel %vm480_vm13, %v475_v45, %v477_v57  ;;  %v482_v1 = vsel %vm480_vm13, %v477_v57, %v479_v53 }
 0x24a   : > { %v488_v62 = vpop.permute.xlu1 %487 }
 0x24b   : > { %v492_v2 = vsel %vm491_vm14, %v486_v46, %v488_v62  ;;  %v493_v3 = vsel %vm491_vm14, %v488_v62, %v490_v60  ;;  %v461_v6 = vpop.permute.xlu0 %460  ;;  %v331_v46 = vmul.f32 %v1263_v35, %v1292_v5 }
 0x24c   : > { %v517_v7 = vsel %vm261_vm0, %v482_v1, %v493_v3  ;;  %v516_v9 = vsel %vm261_vm0, %v481_v63, %v492_v2 }
 0x24d   : > { %556 = vmatprep.subr.mxu0 %v517_v7 }
 0x24e   : > { %v418_v12 = vpop.permute.xlu1 %417  ;;  %557 = vmatpush1.msra.mxu0 %v516_v9 }
 0x24f   : > { %v420_v13 = vpop.permute.xlu0 %419  ;;  %v422_v40 = vsel %vm421_vm3, %v416_v49, %v418_v12 }
 0x250   : > { %v423_v38 = vsel %vm421_vm3, %v418_v12, %v420_v13  ;;  %v218_v12 = vld [vmem:[%s1258_s9 + $0x8] sm:$0xff] }
 0x251   : > { %v619_v13 = vadd.f32 1.0, %v218_v12 }
 0x252   : > { %v404_v14 = vpop.permute.xlu1 %403 }
 0x253   : > { %v433_v17 = vpop.permute.xlu0 %432 }
 0x256   : > { %v463_v19 = vpop.permute.xlu1 %462 }
 0x257   : > { %v467_v20 = vsel %vm466_vm15, %v461_v6, %v463_v19  ;;  %v465_v21 = vpop.permute.xlu0 %464 }
 0x258   : > { %v468_v26 = vsel %vm466_vm15, %v463_v19, %v465_v21  ;;  %v514_v32 = vsel %vm261_vm0, %v450_v28, %v467_v20 }
 0x259   : > { %v515_v29 = vsel %vm261_vm0, %v451_v23, %v468_v26 }
 0x25a   : > { %v435_v31 = vpop.permute.xlu1 %434  ;;  %558 = vmatprep.subr.mxu0 %v515_v29 }
 0x25b   : > { %v439_v33 = vsel %vm438_vm2, %v433_v17, %v435_v31  ;;  %559 = vmatpush1.msra.mxu0 %v514_v32  ;;  %v437_v37 = vpop.permute.xlu0 %436 }
 0x25c   : > { %v440_v39 = vsel %vm438_vm2, %v435_v31, %v437_v37  ;;  %v512_v43 = vsel %vm261_vm0, %v422_v40, %v439_v33 }
 0x25d   : > { %v513_v41 = vsel %vm261_vm0, %v423_v38, %v440_v39 }
 0x25e   : > { %v402_v42 = vpop.permute.xlu1 %401  ;;  %560 = vmatprep.subr.mxu0 %v513_v41 }
 0x25f   : > { %v408_v44 = vsel %vm407_vm4, %v402_v42, %v404_v14  ;;  %561 = vmatpush1.msra.mxu0 %v512_v43  ;;  %v406_v45 = vpop.permute.xlu0 %405  ;;  %v1160_v42 = vmov 1.0  }
 0x260   : > { %v409_v47 = vsel %vm407_vm4, %v404_v14, %v406_v45  ;;  %v510_v51 = vsel %vm261_vm0, %v330_v48, %v408_v44  ;;  %978 = vmatprep.subr.msk.mxu1 %vm799_vm7, %v1160_v42 }
 0x261   : > { %v511_v49 = vsel %vm261_vm0, %v331_v46, %v409_v47  ;;  %979 = vmatpush1.msk.msra.mxu1 %vm799_vm7, %v1160_v42 }
 0x262   : > { %562 = vmatprep.subr.mxu0 %v511_v49 }
 0x263   : > { %563 = vmatpush1.msra.mxu0 %v510_v51 }
 0x264   : > { %977 = vmatmul.mubr.msk.f32.vlgmr.msra.gmra.mxu0 %vm521_vm6, %v520_v50 }
 0x324   : > { %v598_v52 = vpop.f32.mrf.mxu0 }
 0x325   : > { %v609_v53 = vmul.f32 %v598_v52, %v598_v52  ;;  %v603_v61 = vsel %vm261_vm0, %v598_v52, 0.0 }
 0x326   : > { %v600_v5 = vpop.f32.mrf.mxu0 }
 0x327   : > { %v604_v54 = vsel %vm261_vm0, %v600_v5, 0.0  ;;  %v610_v55 = vmul.f32 %v600_v5, %v600_v5  ;;  %v611_v57 = vsel %vm261_vm0, %v609_v53, 0.0 }
 0x328   : > { %v605_v56 = vadd.f32 %v604_v54, %v603_v61 }
 0x329   : > { %v612_v60 = vsel %vm261_vm0, %v610_v55, 0.0 }
 0x32a   : > { %606 = vadd.xlane.f32.xlu0 %v605_v56  ;;  %v613_v62 = vadd.f32 %v612_v60, %v611_v57 }
 0x32c   : > { %614 = vadd.xlane.f32.xlu1 %v613_v62 }
 0x3b3   : > { %v607_v63 = vpop.xlane.xlu0 %606 }
 0x3b4   : > { %v608_v1 = vmul.f32 0.00390625, %v607_v63 }
 0x3b5   : > { %v615_v2 = vpop.xlane.xlu1 %614 }
 0x3b6   : > { %v617_v3 = vmul.f32 %v608_v1, %v608_v1  ;;  %v616_v6 = vmul.f32 0.00390625, %v615_v2  ;;  %v782_v2 = vcombine.low %v1243_v0, %v1243_v0 }
 0x3b8   : > { %v618_v7 = vsub.f32 %v616_v6, %v617_v3 }
 0x3ba   : > { %v620_v9 = vadd.f32 1e-05, %v618_v7 }
 0x3bc   : > { %1078 = vrsqrt.f32 %v620_v9 }
 0x3c9   : > { %v1079_v14 = vpop.eup %1078 }
 0x3ca   : > { %v622_v17 = vmul.f32 %v1079_v14, %v619_v13 }
 0x3cc   : > { %630 = vperm.xlu0 %1073, %v622_v17   ;;  %v623_v19 = vmul.f32 %v622_v17, %v608_v1 }
 0x3ce   : > { %v625_v20 = vrot.slane %v623_v19, 4 }
 0x3d0   : > { %v627_v21 = vsub.f32 %v218_v12, %v625_v20 }
 0x3d2   : > { %637 = vperm.xlu1 %1047, %v627_v21  }
 0x447   : > { %v631_v23 = vpop.permute.xlu0 %630 }
 0x448   : > { %v633_v28 = vmul.f32 %v631_v23, %v598_v52  ;;  %v634_v29 = vmul.f32 %v631_v23, %v600_v5 }
 0x44d   : > { %v638_v26 = vpop.permute.xlu1 %637 }
 0x44e   : > { %v639_v31 = vrot.slane %v638_v26, 4 }
 0x450   : > { %v641_v32 = vadd.f32 %v639_v31, %v633_v28  ;;  %v642_v33 = vadd.f32 %v639_v31, %v634_v29 }
 0x452   : > { %v643_v37 = vmul.f32 0.2, %v641_v32  ;;  %v644_v38 = vmul.f32 0.2, %v642_v33 }
 0x454   : > { %v645_v39 = vmax.f32 %v641_v32, %v643_v37  ;;  %v646_v40 = vmax.f32 %v642_v33, %v644_v38 }
 0x456   : > { %649 = vrot.lane.b32.xlu1 %v645_v39, %s1149_s13 }
 0x45a   : > { %651 = vrot.lane.b32.xlu1 %v646_v40, %s1149_s13  ;;  %s205_s13 = scalar_lea.vmem [#allocation2], %s966_s12 }
 0x45b   : > { %s891_s14 = sshll.u32 %s205_s13, 4  ;;  %s1512_s14 = int_to_ptr.vmem [resolvable:$true] %s891_s14 }
 0x4c8   : > { %v650_v41 = vpop.permute.xlu1 %649 }
 0x4c9   : > { %v1424_v47 = vsel %vm323_vm5, 0.0, %v650_v41 }
 0x4ca   : > { %v664_v56 = vmul.f32 %v1331_v22, %v1424_v47 }
 0x4cc   : > { %v652_v43 = vpop.permute.xlu1 %651 }
 0x4cd   : > { %v1415_v44 = vsel %vm323_vm5, %v650_v41, %v652_v43  ;;  %v658_v45 = vsel %vm323_vm5, %v652_v43, 0.0  ;;  %vm795_vm5 = vcmask 334848  }
 0x4ce   : > { %724 = vrot.lane.b32.xlu1 %v658_v45, %s1152_s22  ;;  %722 = vrot.lane.b32.xlu0 %v1415_v44, %s1152_s22  ;;  %v674_v46 = vmul.f32 %v1415_v44, %v1304_v10  ;;  %v675_v48 = vmul.f32 %v1289_v4, %v658_v45  ;;  %v671_v49 = vmul.f32 %v1415_v44, %v1316_v15  ;;  %v679_v50 = vrot.slane %v1415_v44, 4 }
 0x4cf   : > { %v673_v10 = vmul.f32 %v1270_v58, %v1424_v47  ;;  %v672_v51 = vmul.f32 %v1306_v11, %v658_v45  ;;  %v670_v4 = vmul.f32 %v1272_v59, %v1424_v47  ;;  %v680_v15 = vrot.slane %v658_v45, 4 }
 0x4d0   : > { %v662_v52 = vmul.f32 %v1415_v44, %v1335_v24  ;;  %v678_v58 = vrot.slane %v1424_v47, 4  ;;  %v661_v11 = vmul.f32 %v1297_v8, %v1424_v47  ;;  %v663_v59 = vmul.f32 %v1324_v18, %v658_v45 }
 0x4d1   : > { %v669_v53 = vmul.f32 %v1338_v25, %v658_v45  ;;  %v668_v24 = vmul.f32 %v1415_v44, %v1352_v30  ;;  %v667_v8 = vmul.f32 %v1319_v16, %v1424_v47  ;;  %v665_v55 = vmul.f32 %v1415_v44, %v1359_v36 }
 0x4d2   : > { %720 = vrot.lane.b32.xlu0 %v1424_v47, %s1152_s22  ;;  %774 = vrot.lane.b32.xlu1 %v674_v46, %s1153_s23  ;;  %v666_v30 = vmul.f32 %v1343_v27, %v658_v45  ;;  %v707_v16 = vrot.slane %v664_v56, 4 }
 0x4d3   : > { %v735_v5 = vrot.slane %v669_v53, 4  ;;  %v734_v54 = vrot.slane %v668_v24, 4  ;;  %v733_v18 = vrot.slane %v667_v8, 4  ;;  %v708_v25 = vrot.slane %v665_v55, 4  ;;  %v794_v8 = vld [vmem:[%s1553_s3] sm:$0xff] }
 0x4d4   : > { %v709_v61 = vrot.slane %v666_v30, 4  ;;  %v660_v53 = vmul.f32 %v1263_v35, %v1415_v44 }
 0x4d6   : > { %776 = vrot.lane.b32.xlu1 %v675_v48, %s1153_s23  ;;  %751 = vrot.lane.b32.xlu0 %v671_v49, %s1154_s27 }
 0x4da   : > { %772 = vrot.lane.b32.xlu1 %v673_v10, %s1153_s23  ;;  %761 = vrot.lane.b32.xlu0 %v679_v50, %s1155_s28 }
 0x4de   : > { %753 = vrot.lane.b32.xlu1 %v672_v51, %s1154_s27  ;;  %749 = vrot.lane.b32.xlu0 %v670_v4, %s1154_s27  ;;  %s889_s27 = scalar_lea.hbm %s1554_s4, %s988_s20 }
 0x4e2   : > { %763 = vrot.lane.b32.xlu1 %v680_v15, %s1155_s28  ;;  %696 = vrot.lane.b32.xlu0 %v662_v52, %s1156_s29 }
 0x4e6   : > { %759 = vrot.lane.b32.xlu1 %v678_v58, %s1155_s28  ;;  %694 = vrot.lane.b32.xlu0 %v661_v11, %s1156_s29  ;;  %s877_s28 = scalar_lea.sflag [#allocation3], %s203_s11 }
 0x4ea   : > { %698 = vrot.lane.b32.xlu1 %v663_v59, %s1156_s29  ;;  %683 = vrot.lane.b32.xlu0 %v679_v50, %s1158_s5  ;;  %s1080_s29 = scalar_lea.vmem %s1512_s14, 256 }
 0x4eb   : > { %p1081_p11 = scmp.ne.s32.totalorder %s1512_s14, %s1080_s29 }
 0x4ed   : > { %p1082_p12 = pnand %p1081_p11, %p1225_p5 }
 0x4ee   : > { %740 = vrot.lane.b32.xlu1 %v735_v5, %s1157_s30  ;;  %738 = vrot.lane.b32.xlu0 %v734_v54, %s1157_s30  ;;  %v659_v5 = vmul.f32 %v1261_v34, %v1424_v47 }
 0x4ef   : > { %p1083_p13 = pneg %p1082_p12 }
 0x4f2   : > { %736 = vrot.lane.b32.xlu1 %v733_v18, %s1157_s30  ;;  %712 = vrot.lane.b32.xlu0 %v708_v25, %s1159_s6  ;;  %s1084_s30 = sshll.u32 %s1161_s19, 4  ;;  %s1085_s30 = int_to_ptr.vmem [resolvable:$false] %s1084_s30 }
 0x4f3   : > { %p1087_p0 = scmp.lt.s32.totalorder %s1512_s14, %s1085_s30 }
 0x4f6   : > { %714 = vrot.lane.b32.xlu1 %v709_v61, %s1159_s6  ;;  %681 = vrot.lane.b32.xlu0 %v678_v58, %s1158_s5 }
 0x4fa   : > { %710 = vrot.lane.b32.xlu1 %v707_v16, %s1159_s6 }
 0x4fe   : > { %685 = vrot.lane.b32.xlu1 %v680_v15, %s1158_s5  ;;  %s1086_s5 = scalar_lea.vmem %s1085_s30, 512 }
 0x4ff   : > { %p1088_p1 = scmp.lt.s32.totalorder %s1086_s5, %s1080_s29 }
 0x501   : > { %p1089_p2 = por %p1088_p1, %p1087_p0 }
 0x503   : > { %p1090_p3 = pnand %p1089_p2, %p1083_p13 }
 0x540   : > { %v725_v36 = vpop.permute.xlu1 %724  ;;  %v723_v57 = vpop.permute.xlu0 %722 }
 0x541   : > { %v727_v38 = vsel %vm449_vm1, %v723_v57, %v725_v36 }
 0x544   : > { %v721_v27 = vpop.permute.xlu0 %720  ;;  %v775_v60 = vpop.permute.xlu1 %774 }
 0x545   : > { %v726_v42 = vsel %vm449_vm1, %v721_v27, %v723_v57 }
 0x548   : > { %v777_v62 = vpop.permute.xlu1 %776  ;;  %v752_v63 = vpop.permute.xlu0 %751 }
 0x549   : > { %v779_v1 = vsel %vm505_vm11, %v775_v60, %v777_v62 }
 0x54a   : > { %v793_v22 = vsel %vm261_vm0, %v779_v1, %v1243_v0 }
 0x54b   : > { %825 = vmatprep.subr.mxu1 %v793_v22 }
 0x54c   : > { %v773_v3 = vpop.permute.xlu1 %772  ;;  %v762_v6 = vpop.permute.xlu0 %761 }
 0x54d   : > { %v778_v7 = vsel %vm505_vm11, %v773_v3, %v775_v60 }
 0x54e   : > { %v792_v9 = vsel %vm261_vm0, %v778_v7, %v782_v2 }
 0x54f   : > { %826 = vmatpush1.msra.mxu1 %v792_v9 }
 0x550   : > { %v754_v12 = vpop.permute.xlu1 %753  ;;  %v750_v13 = vpop.permute.xlu0 %749 }
 0x551   : > { %v756_v19 = vsel %vm480_vm13, %v752_v63, %v754_v12  ;;  %v755_v26 = vsel %vm480_vm13, %v750_v13, %v752_v63 }
 0x554   : > { %v764_v14 = vpop.permute.xlu1 %763  ;;  %v697_v17 = vpop.permute.xlu0 %696 }
 0x555   : > { %v766_v20 = vsel %vm491_vm14, %v762_v6, %v764_v14 }
 0x556   : > { %v791_v21 = vsel %vm261_vm0, %v756_v19, %v766_v20 }
 0x557   : > { %827 = vmatprep.subr.mxu1 %v791_v21 }
 0x558   : > { %v760_v0 = vpop.permute.xlu1 %759  ;;  %v695_v23 = vpop.permute.xlu0 %694 }
 0x559   : > { %v765_v28 = vsel %vm491_vm14, %v760_v0, %v762_v6  ;;  %v700_v4 = vsel %vm421_vm3, %v695_v23, %v697_v17 }
 0x55a   : > { %v790_v29 = vsel %vm261_vm0, %v755_v26, %v765_v28 }
 0x55b   : > { %828 = vmatpush1.msra.mxu1 %v790_v29 }
 0x55c   : > { %v699_v31 = vpop.permute.xlu1 %698  ;;  %v684_v32 = vpop.permute.xlu0 %683 }
 0x55d   : > { %v701_v49 = vsel %vm421_vm3, %v697_v17, %v699_v31 }
 0x560   : > { %v741_v33 = vpop.permute.xlu1 %740  ;;  %v739_v37 = vpop.permute.xlu0 %738 }
 0x561   : > { %v743_v39 = vsel %vm466_vm15, %v739_v37, %v741_v33 }
 0x562   : > { %v789_v40 = vsel %vm261_vm0, %v727_v38, %v743_v39 }
 0x563   : > { %829 = vmatprep.subr.mxu1 %v789_v40 }
 0x564   : > { %v737_v41 = vpop.permute.xlu1 %736  ;;  %v713_v46 = vpop.permute.xlu0 %712 }
 0x565   : > { %v742_v43 = vsel %vm466_vm15, %v737_v41, %v739_v37 }
 0x566   : > { %v788_v45 = vsel %vm261_vm0, %v726_v42, %v742_v43 }
 0x567   : > { %830 = vmatpush1.msra.mxu1 %v788_v45 }
 0x568   : > { %v715_v48 = vpop.permute.xlu1 %714  ;;  %v682_v15 = vpop.permute.xlu0 %681 }
 0x569   : > { %v717_v10 = vsel %vm438_vm2, %v713_v46, %v715_v48  ;;  %v687_v11 = vsel %vm407_vm4, %v682_v15, %v684_v32 }
 0x56a   : > { %v787_v50 = vsel %vm261_vm0, %v701_v49, %v717_v10  ;;  %v784_v55 = vsel %vm261_vm0, %v659_v5, %v687_v11 }
 0x56b   : > { %831 = vmatprep.subr.mxu1 %v787_v50 }
 0x56c   : > { %v711_v51 = vpop.permute.xlu1 %710 }
 0x56d   : > { %v716_v52 = vsel %vm438_vm2, %v711_v51, %v713_v46 }
 0x56e   : > { %v786_v58 = vsel %vm261_vm0, %v700_v4, %v716_v52 }
 0x56f   : > { %832 = vmatpush1.msra.mxu1 %v786_v58 }
 0x570   : > { %v686_v59 = vpop.permute.xlu1 %685 }
 0x571   : > { %v688_v24 = vsel %vm407_vm4, %v684_v32, %v686_v59 }
 0x572   : > { %v785_v54 = vsel %vm261_vm0, %v660_v53, %v688_v24 }
 0x573   : > { %833 = vmatprep.subr.mxu1 %v785_v54 }
 0x574   : > { %834 = vmatpush1.msra.mxu1 %v784_v55 }
 0x575   : > { %980 = vmatmul.mubr.msk.f32.vlgmr.msra.gmra.mxu1 %vm795_vm5, %v794_v8 }
 0x635   : > { %v869_v35 = vpop.f32.mrf.mxu1 }
 0x636   : > { %874 = vst [vmem:[%s205_s13] sm:$0xff] %v869_v35 }
 0x637   : > { %v871_v34 = vpop.f32.mrf.mxu1 }
 0x638   : > { %875 = vst [vmem:[%s205_s13 + $0x8] sm:$0xff] %v871_v34 }
 0x639   : > { %1093 = shalt.err (!%p1090_p3)
}
 0x63a   : > { %s1094_s6 = scalar_lea.hbm %s889_s27, 256  ;;  %s1098_s9 = scalar_lea.hbm %s1554_s4, 512 }
 0x63b   : > { %p1095_p4 = scmp.ne.s32.totalorder %s889_s27, %s1094_s6  ;;  %p1099_p9 = scmp.lt.s32.totalorder %s889_s27, %s1554_s4 }
 0x63c   : > { %p1100_p10 = scmp.lt.s32.totalorder %s1098_s9, %s1094_s6 }
 0x63d   : > { %p1096_p7 = pnand %p1095_p4, %p1225_p5 }
 0x63e   : > { %p1101_p11 = por %p1100_p10, %p1099_p9 }
 0x63f   : > { %p1097_p8 = pneg %p1096_p7 }
 0x641   : > { %p1102_p12 = pnand %p1101_p11, %p1097_p8 }
 0x643   : > { %1105 = shalt.err (!%p1102_p12)
}
 0x644   : > { %989 = dma.vmem_to_hbm [thread:$0]  (%p1225_p5), %s1512_s14, 256, %s889_s27, %s877_s28  }
 0x645 PF: > { %p995_p13 = scmp.ge.s32.totalorder %s1140_s18, 2  ;;  %s903_s12 = sand.u32 1, %s1128_s15  }
 0x646   : > { %s904_s13 = scalar_lea.sflag [#allocation3], %s903_s12 }
 0x647   : > { %p992_p0 = pnand %p995_p13, %p1229_p6 }
 0x649   : > { %p993_p1 = pneg %p992_p0 }
 0x64b   : > { %1123 = dma.done.wait (%p993_p1), %s904_s13, 256  }
 0x64c   : > { %1125 = vsyncadd (%p993_p1), %s904_s13, 4294967040  ;;  %p14_p2 = scmp.ge.s32.totalorder %s1212_s21, 4   ;;  %s1557_s15 = smov %s1132_s16 }
 0x64d   : > { %s1558_s16 = smov %s1136_s17  ;;  %s1559_s17 = smov %s1223_s24 }
 0x64e   : > { %s1560_s18 = smov %s1212_s21  ;;  %16 = sbr.rel (!%p14_p2) target bundleno = 3 (0x3), region = 74 }
 0x653   :  { %909 = vsyncpa [#allocation3], 1 }
 0x654   :  { %911 = vsyncpa [#allocation3 + $0x1], 1 }

</bundles_post_ra>
